<compile_context>
chip_gen: v7x
topology: tpu7x:2x2x1
jax: 0.10.0
libtpu: 0.0.40
codegen_flags: <defaults>
</compile_context>

<pallas_src>
import jax
import jax.numpy as jnp
from jax.experimental import pallas as pl
from jax.experimental.pallas import tpu as pltpu

LANE = 128
SUBLANE = 8
MAX_TILE = 512           # row/column tile of A_hat (node axis)


def _round_up(x, m):
    return (x + m - 1) // m * m


# ---------------------------------------------------------------------------
# Pallas kernel: one GCN layer   out = ReLU(A @ (H @ W) + b)
# grid = (i: row tiles of A [parallel], k: column tiles of A [reduction])
# ---------------------------------------------------------------------------
def gcn_layer_kernel(a_ref, h_ref, w_ref, b_ref, o_ref, acc_ref):
    k = pl.program_id(1)

    @pl.when(k == 0)
    def _():
        acc_ref[...] = jnp.zeros_like(acc_ref)

    # H_k @ W   (bf16 MXU operands, f32 accumulation)
    hw = jnp.dot(h_ref[...], w_ref[...], preferred_element_type=jnp.float32)
    # A_ik @ (H_k W), accumulated in f32
    acc_ref[...] += jnp.dot(
        a_ref[...], hw.astype(jnp.bfloat16), preferred_element_type=jnp.float32
    )

    @pl.when(k == pl.num_programs(1) - 1)
    def _():
        # bias + ReLU in f32, store lane-dense bf16 activation
        o_ref[...] = jnp.maximum(acc_ref[...] + b_ref[...], 0.0).astype(o_ref.dtype)


def gcn_layer_pallas(a, h, w, b, *, tm, tk):
    """a:(Np,Np) bf16, h:(Np,Fin_p) bf16, w:(Fin_p,Fout_p) bf16, b:(1,Fout_p) f32."""
    n_pad = a.shape[0]
    f_in_pad = h.shape[1]
    f_out_pad = w.shape[1]
    grid = (n_pad // tm, n_pad // tk)

    return pl.pallas_call(
        gcn_layer_kernel,
        out_shape=jax.ShapeDtypeStruct((n_pad, f_out_pad), jnp.bfloat16),
        grid_spec=pltpu.PrefetchScalarGridSpec(
            num_scalar_prefetch=0,
            grid=grid,
            in_specs=[
                pl.BlockSpec((tm, tk), lambda i, k: (i, k)),               # A tile
                pl.BlockSpec((tk, f_in_pad), lambda i, k: (k, 0)),         # H tile
                pl.BlockSpec((f_in_pad, f_out_pad), lambda i, k: (0, 0)),  # W (resident)
                pl.BlockSpec((1, f_out_pad), lambda i, k: (0, 0)),         # b (resident)
            ],
            out_specs=pl.BlockSpec((tm, f_out_pad), lambda i, k: (i, 0)),
            scratch_shapes=[pltpu.VMEM((tm, f_out_pad), jnp.float32)],
        ),
        compiler_params=pltpu.CompilerParams(
            dimension_semantics=("parallel", "arbitrary"),
            vmem_limit_bytes=48 * 1024 * 1024,   # headroom on v5e/v6e/v7x
        ),
    )(a, h, w, b)


# ---------------------------------------------------------------------------
# Full model wrapper: pad to lane/tile-aligned shapes, run 3 fused layers.
# ---------------------------------------------------------------------------
def gcn_small_pallas(a_hat, x, params):
    n, f_in = x.shape
    f_out = params[-1][0].shape[1]

    # node-axis tiling: single full block for tiny graphs, 512-tiles otherwise
    n8 = _round_up(n, SUBLANE)
    tile = min(MAX_TILE, n8)
    n_pad = _round_up(n, tile)

    # pad + cast adjacency to bf16 (halves VMEM/HBM traffic; f32 accumulate)
    a = jnp.zeros((n_pad, n_pad), jnp.bfloat16).at[:n, :n].set(
        a_hat.astype(jnp.bfloat16))

    # pad input features to 128 lanes, bf16 for MXU
    f_in_pad = _round_up(f_in, LANE)
    h = jnp.zeros((n_pad, f_in_pad), jnp.bfloat16).at[:n, :f_in].set(
        x.astype(jnp.bfloat16))

    for w_, b_ in params:
        fi, fo = w_.shape
        fi_pad = _round_up(fi, LANE)
        fo_pad = _round_up(fo, LANE)
        w_pad = jnp.zeros((fi_pad, fo_pad), jnp.bfloat16).at[:fi, :fo].set(
            w_.astype(jnp.bfloat16))
        b_pad = jnp.zeros((1, fo_pad), jnp.float32).at[:, :fo].set(
            b_.reshape(1, -1).astype(jnp.float32))
        h = gcn_layer_pallas(a, h, w_pad, b_pad, tm=tile, tk=tile)

    # slice away node/lane padding, return f32 like the torch module
    return h[:n, :f_out].astype(jnp.float32)


# ---------------------------------------------------------------------------
# Glue: GCNConv-style normalization (add self loops, symmetric norm) -> dense A_hat.
# ---------------------------------------------------------------------------
def build_normalized_adjacency(edge_index, edge_weight, num_nodes):
    loop_idx = jnp.arange(num_nodes, dtype=edge_index.dtype)
    row = jnp.concatenate([edge_index[0], loop_idx])
    col = jnp.concatenate([edge_index[1], loop_idx])
    w = jnp.concatenate([edge_weight, jnp.ones((num_nodes,), edge_weight.dtype)])

    deg = jnp.zeros((num_nodes,), jnp.float32).at[col].add(w)
    deg_inv_sqrt = jnp.where(deg > 0, jax.lax.rsqrt(deg), 0.0)
    norm = deg_inv_sqrt[row] * w * deg_inv_sqrt[col]

    # out[i] = sum_{(j->i)} norm * x'[j]   =>   A_hat[i, j] += norm
    a_hat = jnp.zeros((num_nodes, num_nodes), jnp.float32).at[col, row].add(norm)
    return a_hat


def init_params(key, features_in=9, hidden1=18, hidden2=54, features_out=108):
    dims = [(features_in, hidden1), (hidden1, hidden2), (hidden2, features_out)]
    params = []
    for i, (fin, fout) in enumerate(dims):
        k = jax.random.fold_in(key, i)
        limit = (6.0 / (fin + fout)) ** 0.5
        w = jax.random.uniform(k, (fin, fout), jnp.float32, -limit, limit)
        b = jnp.zeros((1, fout), jnp.float32)
        params.append((w, b))
    return params


def gcn_small_reference(a_hat, x, params):
    # mirrors the kernel's numerics: bf16 MXU operands, f32 accumulate,
    # f32 bias+ReLU, bf16 inter-layer activations.  ReLU follows conv3 too,
    # matching the original GCN_small.forward.
    a = a_hat.astype(jnp.bfloat16)
    h = x.astype(jnp.float32)
    for w, b in params:
        hw = jnp.dot(h.astype(jnp.bfloat16), w.astype(jnp.bfloat16),
                     preferred_element_type=jnp.float32)
        ah = jnp.dot(a, hw.astype(jnp.bfloat16),
                     preferred_element_type=jnp.float32)
        h = jnp.maximum(ah + b, 0.0)
    return h.astype(jnp.bfloat16).astype(jnp.float32)


if __name__ == "__main__":
    key = jax.random.PRNGKey(0)
    k_x, k_e, k_w, k_p = jax.random.split(key, 4)

    # small synthetic graph: N nodes, E directed edges, 9 input features
    N, E, F_IN = 16, 48, 9
    x = jax.random.normal(k_x, (N, F_IN), jnp.float32)
    edge_index = jax.random.randint(k_e, (2, E), 0, N, jnp.int32)
    edge_attr = jax.random.uniform(k_w, (E, 1), jnp.float32, 0.1, 1.0)
    edge_weight = edge_attr.reshape(-1)  # data.edge_attr.view(-1)

    params = init_params(k_p)
    a_hat = build_normalized_adjacency(edge_index, edge_weight, N)

    out = jax.jit(gcn_small_pallas)(a_hat, x, params)
    out = jax.block_until_ready(out)

    ref = gcn_small_reference(a_hat, x, params)
    assert out.shape == (N, 108)
    assert jnp.allclose(out, ref, rtol=2e-2, atol=1e-2), (
        "max abs diff = %f" % float(jnp.max(jnp.abs(out - ref))))

    print("KERNEL_OK")
</pallas_src>

<mosaic_0001>
module attributes {stable_mosaic.version = 11 : i64} {
  func.func @gcn_layer_kernel(%arg0: i32, %arg1: i32, %arg2: memref<16x16xbf16, #tpu.memory_space<vmem>>, %arg3: memref<16x128xbf16, #tpu.memory_space<vmem>>, %arg4: memref<128x128xbf16, #tpu.memory_space<vmem>>, %arg5: memref<1x128xf32, #tpu.memory_space<vmem>>, %arg6: memref<16x128xbf16, #tpu.memory_space<vmem>>, %arg7: memref<16x128xf32, #tpu.memory_space<vmem>>) attributes {dimension_semantics = [#tpu.dimension_semantics<parallel>, #tpu.dimension_semantics<arbitrary>], iteration_bounds = array<i64: 1, 1>, scalar_prefetch = 0 : i64, scratch_operands = 1 : i64, tpu.core_type = #tpu.core_type<tc>, window_params = [{transform_indices = @transform_0, window_bounds = array<i64: 16, 16>}, {transform_indices = @transform_1, window_bounds = array<i64: 16, 128>}, {pipeline_mode = #tpu.pipeline_mode<synchronous>, transform_indices = @transform_2, window_bounds = array<i64: 128, 128>}, {pipeline_mode = #tpu.pipeline_mode<synchronous>, transform_indices = @transform_3, window_bounds = array<i64: 1, 128>}, {transform_indices = @transform_4, window_bounds = array<i64: 16, 128>}]} {
    %c0_i32 = arith.constant 0 : i32
    %0 = arith.cmpi eq, %arg1, %c0_i32 : i32
    %1 = arith.extui %0 : i1 to i32
    %c0_i32_0 = arith.constant 0 : i32
    %2 = arith.cmpi ne, %1, %c0_i32_0 : i32
    scf.if %2 {
      %cst_13 = arith.constant 0.000000e+00 : f32
      %15 = vector.broadcast %cst_13 : f32 to vector<16x128xf32>
      %c0_14 = arith.constant 0 : index
      %c0_15 = arith.constant 0 : index
      %16 = vector.load %arg7[%c0_14, %c0_15] : memref<16x128xf32, #tpu.memory_space<vmem>>, vector<16x128xf32>
      tpu.vector_store %arg7[%c0_14, %c0_15], %15 {strides = array<i32>} : memref<16x128xf32, #tpu.memory_space<vmem>>, vector<16x128xf32>,
    } else {
    }
    %c0 = arith.constant 0 : index
    %c0_1 = arith.constant 0 : index
    %3 = vector.load %arg3[%c0, %c0_1] : memref<16x128xbf16, #tpu.memory_space<vmem>>, vector<16x128xbf16>
    %c0_2 = arith.constant 0 : index
    %c0_3 = arith.constant 0 : index
    %4 = vector.load %arg4[%c0_2, %c0_3] : memref<128x128xbf16, #tpu.memory_space<vmem>>, vector<128x128xbf16>
    %cst = arith.constant dense<0.000000e+00> : vector<16x128xf32>
    %5 = tpu.matmul %3, %4, %cst {dimension_numbers = #tpu.dot_dimension_numbers<[1], [0], [0], [1], [0, 0, 1, 1], [], []>} : vector<16x128xbf16>, vector<128x128xbf16>, vector<16x128xf32> -> vector<16x128xf32>
    %c0_4 = arith.constant 0 : index
    %c0_5 = arith.constant 0 : index
    %6 = vector.load %arg7[%c0_4, %c0_5] : memref<16x128xf32, #tpu.memory_space<vmem>>, vector<16x128xf32>
    %c0_6 = arith.constant 0 : index
    %c0_7 = arith.constant 0 : index
    %7 = vector.load %arg2[%c0_6, %c0_7] : memref<16x16xbf16, #tpu.memory_space<vmem>>, vector<16x16xbf16>
    %8 = arith.truncf %5 : vector<16x128xf32> to vector<16x128xbf16>
    %cst_8 = arith.constant dense<0.000000e+00> : vector<16x128xf32>
    %9 = tpu.matmul %7, %8, %cst_8 {dimension_numbers = #tpu.dot_dimension_numbers<[1], [0], [0], [1], [0, 0, 1, 1], [], []>} : vector<16x16xbf16>, vector<16x128xbf16>, vector<16x128xf32> -> vector<16x128xf32>
    %10 = arith.addf %6, %9 : vector<16x128xf32>
    %c0_9 = arith.constant 0 : index
    %c0_10 = arith.constant 0 : index
    %11 = vector.load %arg7[%c0_9, %c0_10] : memref<16x128xf32, #tpu.memory_space<vmem>>, vector<16x128xf32>
    tpu.vector_store %arg7[%c0_9, %c0_10], %10 {strides = array<i32>} : memref<16x128xf32, #tpu.memory_space<vmem>>, vector<16x128xf32>,
    %c0_i32_11 = arith.constant 0 : i32
    %12 = arith.cmpi eq, %arg1, %c0_i32_11 : i32
    %13 = arith.extui %12 : i1 to i32
    %c0_i32_12 = arith.constant 0 : i32
    %14 = arith.cmpi ne, %13, %c0_i32_12 : i32
    scf.if %14 {
      %c0_13 = arith.constant 0 : index
      %c0_14 = arith.constant 0 : index
      %15 = vector.load %arg7[%c0_13, %c0_14] : memref<16x128xf32, #tpu.memory_space<vmem>>, vector<16x128xf32>
      %c0_15 = arith.constant 0 : index
      %c0_16 = arith.constant 0 : index
      %16 = vector.load %arg5[%c0_15, %c0_16] : memref<1x128xf32, #tpu.memory_space<vmem>>, vector<1x128xf32>
      %17 = vector.broadcast %16 : vector<1x128xf32> to vector<16x128xf32>
      %18 = arith.addf %15, %17 : vector<16x128xf32>
      %cst_17 = arith.constant 0.000000e+00 : f32
      %19 = vector.broadcast %cst_17 : f32 to vector<16x128xf32>
      %20 = arith.maximumf %18, %19 : vector<16x128xf32>
      %21 = arith.truncf %20 : vector<16x128xf32> to vector<16x128xbf16>
      %c0_18 = arith.constant 0 : index
      %c0_19 = arith.constant 0 : index
      %22 = vector.load %arg6[%c0_18, %c0_19] : memref<16x128xbf16, #tpu.memory_space<vmem>>, vector<16x128xbf16>
      tpu.vector_store %arg6[%c0_18, %c0_19], %21 {strides = array<i32>} : memref<16x128xbf16, #tpu.memory_space<vmem>>, vector<16x128xbf16>,
    } else {
    }
    return
  }
  func.func @transform_0(%arg0: i32, %arg1: i32) -> (i32, i32) {
    %c0_i32 = arith.constant 0 : i32
    return %arg0, %arg1 : i32, i32
  }
  func.func @transform_1(%arg0: i32, %arg1: i32) -> (i32, i32) {
    %c0_i32 = arith.constant 0 : i32
    %c0_i32_0 = arith.constant 0 : i32
    return %arg1, %c0_i32 : i32, i32
  }
  func.func @transform_2(%arg0: i32, %arg1: i32) -> (i32, i32) {
    %c0_i32 = arith.constant 0 : i32
    %c0_i32_0 = arith.constant 0 : i32
    %c0_i32_1 = arith.constant 0 : i32
    return %c0_i32, %c0_i32_0 : i32, i32
  }
  func.func @transform_3(%arg0: i32, %arg1: i32) -> (i32, i32) {
    %c0_i32 = arith.constant 0 : i32
    %c0_i32_0 = arith.constant 0 : i32
    %c0_i32_1 = arith.constant 0 : i32
    return %c0_i32, %c0_i32_0 : i32, i32
  }
  func.func @transform_4(%arg0: i32, %arg1: i32) -> (i32, i32) {
    %c0_i32 = arith.constant 0 : i32
    %c0_i32_0 = arith.constant 0 : i32
    return %arg0, %c0_i32 : i32, i32
  }
}

</mosaic_0001>

<bundles_post_ra>
// kernel: gcn_small_pallas.3
= control target key start
LH: loop header
LB: loop body
LE: loop exit
PB: predicated region body
PF: predicated region fallthrough
CT: control target
= control target key end

     0   :  { %v296_v0 = vmov 0.0   ;;  %vm297_vm0 = vmmov 0   ;;  %vm147_vm1 = vcmask 130048   ;;  %s359_s2 = inlined_call_operand.vmem [shape: bf16[128,128], index: 2, kind: input, shape index: {}]   ;;  %s360_s1 = inlined_call_operand.vmem [shape: bf16[16,128], index: 1, kind: input, shape index: {}]   ;;  %s361_s0 = inlined_call_operand.vmem [shape: bf16[16,16], index: 0, kind: input, shape index: {}]   ;;  %s362_s3 = inlined_call_operand.vmem [shape: f32[1,128], index: 3, kind: input, shape index: {}]   ;;  %s363_s4 = inlined_call_operand.vmem [shape: bf16[16,128], index: 4, kind: output, shape index: {}]  }
   0x1   :  { %258 = vmatprep.subr.bf16.mxu0 %v296_v0  ;;  %v286_v1 = vld [vmem:[%s359_s2] sm:$0xff]   ;;  %274 = vmatprep.mubr.msk.bf16.mxu0 %vm297_vm0, %v296_v0  ;;  %v287_v2 = vld [vmem:[%s359_s2 + $0x8] sm:$0xff]   ;;  %v288_v3 = vld [vmem:[%s359_s2 + $0x10] sm:$0xff]  }
   0x2   :  { %278 = vmatprep.subr.bf16.mxu1 %v296_v0  ;;  %280 = vmatprep.mubr.msk.bf16.mxu1 %vm297_vm0, %v296_v0  ;;  %v289_v4 = vld [vmem:[%s359_s2 + $0x18] sm:$0xff]   ;;  %v290_v5 = vld [vmem:[%s359_s2 + $0x20] sm:$0xff]   ;;  %v291_v6 = vld [vmem:[%s359_s2 + $0x28] sm:$0xff]  }
   0x3   :  { %259 = vmatpush3.bf16.msra.mxu0 %v286_v1  ;;  %v292_v7 = vld [vmem:[%s359_s2 + $0x30] sm:$0xff]   ;;  %v293_v8 = vld [vmem:[%s359_s2 + $0x38] sm:$0xff]   ;;  %v294_v9 = vld [vmem:[%s360_s1] sm:$0xff]  }
   0x4   :  { %260 = vmatprep.subr.bf16.mxu0 %v296_v0  ;;  %v295_v15 = vld [vmem:[%s361_s0] sm:$0xff]  }
   0x5   :  { %v237_v16 = vld [vmem:[%s362_s3] ss:$0 sm:$0xff] }
   0x7   :  { %261 = vmatpush3.bf16.msra.mxu0 %v287_v2 }
   0x8   :  { %262 = vmatprep.subr.bf16.mxu0 %v296_v0 }
   0xb   :  { %263 = vmatpush3.bf16.msra.mxu0 %v288_v3 }
   0xc   :  { %264 = vmatprep.subr.bf16.mxu0 %v296_v0 }
   0xf   :  { %265 = vmatpush3.bf16.msra.mxu0 %v289_v4 }
  0x10   :  { %266 = vmatprep.subr.bf16.mxu0 %v296_v0 }
  0x13   :  { %267 = vmatpush3.bf16.msra.mxu0 %v290_v5 }
  0x14   :  { %268 = vmatprep.subr.bf16.mxu0 %v296_v0 }
  0x17   :  { %269 = vmatpush3.bf16.msra.mxu0 %v291_v6 }
  0x18   :  { %270 = vmatprep.subr.bf16.mxu0 %v296_v0 }
  0x1b   :  { %271 = vmatpush3.bf16.msra.mxu0 %v292_v7 }
  0x1c   :  { %272 = vmatprep.subr.bf16.mxu0 %v296_v0 }
  0x1f   :  { %273 = vmatpush3.bf16.msra.mxu0 %v293_v8 }
  0x22   :  { %275 = vmatmul.mubr.bf16.vlgmr.msra.gmra.mrb[0].mxu0 %v294_v9 }
  0xf5   :  { %v130_v10 = vpop.f32.mrb[0].mxu0 }
  0xf6   :  { %v276_v11 = vpop.f32.mrb[1].mxu0 }
  0xf7   :  { %v133_v12 = vpop.f32.mrb[2].mxu0 }
  0xf8   :  { %v141_v13 = vpack.c.bf16 %v133_v12, %v130_v10  ;;  %v277_v14 = vpop.f32.mrb[3].mxu0 }
  0xfa   :  { %279 = vmatpush3.bf16.msra.mxu1 %v141_v13 }
  0xfd   :  { %281 = vmatmul.mubr.msk.bf16.vlgmr.msra.gmra.mrb[0].mxu1 %vm147_vm1, %v295_v15 }
 0x1d0   :  { %v185_v17 = vpop.f32.mrb[0].mxu1 }
 0x1d1   :  { %v208_v18 = vadd.f32 %v237_v16, %v185_v17  ;;  %v282_v19 = vpop.f32.mrb[1].mxu1 }
 0x1d2   :  { %v188_v20 = vpop.f32.mrb[2].mxu1 }
 0x1d3   :  { %v209_v21 = vadd.f32 %v237_v16, %v188_v20  ;;  %v283_v22 = vpop.f32.mrb[3].mxu1  ;;  %v210_v23 = vmax.f32 %v208_v18, 0.0 }
 0x1d5   :  { %v211_v24 = vmax.f32 %v209_v21, 0.0 }
 0x1d7   :  { %v245_v25 = vpack.c.bf16 %v211_v24, %v210_v23 }
 0x1d9   :  { %246 = vst [vmem:[%s363_s4] sm:$0xff] %v245_v25  }

</bundles_post_ra>
